<compile_context>
chip_gen: v5e
topology: v5e:2x2
jax: 0.10.0
libtpu: 0.0.40
codegen_flags: <defaults>
</compile_context>

<pallas_src>
import functools

import jax
import jax.numpy as jnp
from jax.experimental import pallas as pl
from jax.experimental.pallas import tpu as pltpu

MAX_POS = 56  # embedding table size, as in nn.Embedding(56, num_pos_feats)


def _pos_embed_kernel(col_ref, row_ref, out_ref, *, h, w, f):
    # col_ref: (F, 1, W)  = col_embed[:W].T[:, None, :]
    # row_ref: (F, H, 1)  = row_embed[:H].T[:, :, None]
    # out_ref: (2F, H, W) NCHW block (sublanes = H, lanes = W)

    # Channels [0, F): column embedding, constant along H (sublane broadcast).
    out_ref[0:f, :, :] = jnp.broadcast_to(
        col_ref[...], (f, h, w)).astype(out_ref.dtype)

    # Channels [F, 2F): row embedding, constant along W (lane broadcast).
    out_ref[f:2 * f, :, :] = jnp.broadcast_to(
        row_ref[...], (f, h, w)).astype(out_ref.dtype)


def position_embedding_learned(x, col_weight, row_weight):
    """x: (B, C, H, W); col_weight/row_weight: (56, F). Returns (B, 2F, H, W)."""
    b = x.shape[0]
    h, w = x.shape[-2], x.shape[-1]
    f = col_weight.shape[-1]
    assert h <= MAX_POS and w <= MAX_POS, "spatial dims exceed embedding table"

    # v5e has no native bf16 VPU ops: upcast the tiny tables once here.
    compute_dtype = (jnp.float32 if col_weight.dtype == jnp.bfloat16
                     else col_weight.dtype)

    # Tiny (<=56 x F) slice + transpose + newaxis in the wrapper; keeps the
    # kernel body completely free of reshapes / transposes.
    col3 = col_weight[:w, :].astype(compute_dtype).T[:, None, :]   # (F, 1, W)
    row3 = row_weight[:h, :].astype(compute_dtype).T[:, :, None]   # (F, H, 1)

    kernel = functools.partial(_pos_embed_kernel, h=h, w=w, f=f)

    pos = pl.pallas_call(
        kernel,
        out_shape=jax.ShapeDtypeStruct((2 * f, h, w), col_weight.dtype),
        grid=(1,),                                  # compute once, no pipeline
        in_specs=[
            pl.BlockSpec((f, 1, w), lambda i: (0, 0, 0)),   # col table (resident)
            pl.BlockSpec((f, h, 1), lambda i: (0, 0, 0)),   # row table (resident)
        ],
        out_specs=pl.BlockSpec((2 * f, h, w), lambda i: (0, 0, 0)),
        compiler_params=pltpu.CompilerParams(
            dimension_semantics=("arbitrary",)),
    )(col3, row3)

    # Lazy batch broadcast — stays fused into the consumer (never writes B
    # copies to HBM unless the consumer forces materialization).
    return jnp.broadcast_to(pos[None], (b, 2 * f, h, w))


if __name__ == "__main__":
    num_pos_feats = 32          # small hidden size for the synthetic test
    B, C, H, W = 2, 4, 16, 16

    key = jax.random.PRNGKey(0)
    k_row, k_col, k_x = jax.random.split(key, 3)

    # nn.init.uniform_  -> U[0, 1)
    row_weight = jax.random.uniform(k_row, (MAX_POS, num_pos_feats), jnp.float32)
    col_weight = jax.random.uniform(k_col, (MAX_POS, num_pos_feats), jnp.float32)
    x = jax.random.normal(k_x, (B, C, H, W), jnp.float32)

    pos = position_embedding_learned(x, col_weight, row_weight)
    pos = jax.block_until_ready(pos)

    # Reference check (pure JAX, mirrors the torch forward).
    x_emb = col_weight[:W]                                   # (W, F)
    y_emb = row_weight[:H]                                   # (H, F)
    ref = jnp.concatenate(
        [jnp.broadcast_to(x_emb[None, :, :], (H, W, num_pos_feats)),
         jnp.broadcast_to(y_emb[:, None, :], (H, W, num_pos_feats))],
        axis=-1)
    ref = jnp.broadcast_to(jnp.transpose(ref, (2, 0, 1))[None],
                           (B, 2 * num_pos_feats, H, W))

    assert pos.shape == (B, 2 * num_pos_feats, H, W)
    assert pos.dtype == jnp.float32
    assert jnp.allclose(pos, ref), "mismatch vs reference"
    print("KERNEL_OK")
</pallas_src>

<mosaic_0001>
module attributes {stable_mosaic.version = 11 : i64} {
  func.func @_pos_embed_kernel(%arg0: i32, %arg1: memref<32x1x16xf32, #tpu.memory_space<vmem>>, %arg2: memref<32x16x1xf32, #tpu.memory_space<vmem>>, %arg3: memref<64x16x16xf32, #tpu.memory_space<vmem>>) attributes {dimension_semantics = [#tpu.dimension_semantics<arbitrary>], iteration_bounds = array<i64: 1>, scalar_prefetch = 0 : i64, scratch_operands = 0 : i64, tpu.core_type = #tpu.core_type<tc>, window_params = [{pipeline_mode = #tpu.pipeline_mode<synchronous>, transform_indices = @transform_0, window_bounds = array<i64: 32, 1, 16>}, {pipeline_mode = #tpu.pipeline_mode<synchronous>, transform_indices = @transform_1, window_bounds = array<i64: 32, 16, 1>}, {pipeline_mode = #tpu.pipeline_mode<synchronous>, transform_indices = @transform_2, window_bounds = array<i64: 64, 16, 16>}]} {
    %c0 = arith.constant 0 : index
    %c0_0 = arith.constant 0 : index
    %c0_1 = arith.constant 0 : index
    %0 = vector.load %arg1[%c0, %c0_0, %c0_1] : memref<32x1x16xf32, #tpu.memory_space<vmem>>, vector<32x1x16xf32>
    %1 = vector.shape_cast %0 : vector<32x1x16xf32> to vector<32x1x16xf32>
    %2 = vector.broadcast %1 : vector<32x1x16xf32> to vector<32x16x16xf32>
    %c0_2 = arith.constant 0 : index
    %c0_3 = arith.constant 0 : index
    %c0_4 = arith.constant 0 : index
    %3 = vector.load %arg3[%c0_2, %c0_3, %c0_4] : memref<64x16x16xf32, #tpu.memory_space<vmem>>, vector<32x16x16xf32>
    tpu.vector_store %arg3[%c0_2, %c0_3, %c0_4], %2 {strides = array<i32>} : memref<64x16x16xf32, #tpu.memory_space<vmem>>, vector<32x16x16xf32>,
    %c0_5 = arith.constant 0 : index
    %c0_6 = arith.constant 0 : index
    %c0_7 = arith.constant 0 : index
    %4 = vector.load %arg2[%c0_5, %c0_6, %c0_7] : memref<32x16x1xf32, #tpu.memory_space<vmem>>, vector<32x16x1xf32>
    %5 = vector.shape_cast %4 : vector<32x16x1xf32> to vector<32x16x1xf32>
    %6 = vector.broadcast %5 : vector<32x16x1xf32> to vector<32x16x16xf32>
    %c32 = arith.constant 32 : index
    %c0_8 = arith.constant 0 : index
    %c0_9 = arith.constant 0 : index
    %7 = vector.load %arg3[%c32, %c0_8, %c0_9] : memref<64x16x16xf32, #tpu.memory_space<vmem>>, vector<32x16x16xf32>
    tpu.vector_store %arg3[%c32, %c0_8, %c0_9], %6 {strides = array<i32>} : memref<64x16x16xf32, #tpu.memory_space<vmem>>, vector<32x16x16xf32>,
    return
  }
  func.func @transform_0(%arg0: i32) -> (i32, i32, i32) {
    %c0_i32 = arith.constant 0 : i32
    %c0_i32_0 = arith.constant 0 : i32
    %c0_i32_1 = arith.constant 0 : i32
    %c0_i32_2 = arith.constant 0 : i32
    return %c0_i32, %c0_i32_0, %c0_i32_1 : i32, i32, i32
  }
  func.func @transform_1(%arg0: i32) -> (i32, i32, i32) {
    %c0_i32 = arith.constant 0 : i32
    %c0_i32_0 = arith.constant 0 : i32
    %c0_i32_1 = arith.constant 0 : i32
    %c0_i32_2 = arith.constant 0 : i32
    return %c0_i32, %c0_i32_0, %c0_i32_1 : i32, i32, i32
  }
  func.func @transform_2(%arg0: i32) -> (i32, i32, i32) {
    %c0_i32 = arith.constant 0 : i32
    %c0_i32_0 = arith.constant 0 : i32
    %c0_i32_1 = arith.constant 0 : i32
    %c0_i32_2 = arith.constant 0 : i32
    return %c0_i32, %c0_i32_0, %c0_i32_1 : i32, i32, i32
  }
}

</mosaic_0001>

<bundles_post_ra>
// kernel: tpu_custom_call.1
= control target key start
LH: loop header
LB: loop body
LE: loop exit
PB: predicated region body
PF: predicated region fallthrough
CT: control target
= control target key end

     0   :  { %v757_v0 = vmov 0   ;;  %vm139_vm0 = vcmask 130048   ;;  %s1573_s1 = inlined_call_operand.vmem [shape: f32[32,16,1], index: 1, kind: input, shape index: {}]   ;;  %s1574_s2 = inlined_call_operand.vmem [shape: f32[64,16,16], index: 2, kind: output, shape index: {}]   ;;  %s1575_s0 = inlined_call_operand.vmem [shape: f32[32,1,16], index: 0, kind: input, shape index: {}]  }
   0x1   :  { %724 = vset.pattern.permute.xlu2 %v757_v0  ;;  %723 = vset.pattern.permute.xlu1 %v757_v0  ;;  %v208_v1 = vld [vmem:[%s1573_s1 + $0x20] sm:$0xff]  ;;  %v206_v2 = vld [vmem:[%s1573_s1 + $0x10] sm:$0xff]  ;;  %v209_v4 = vld [vmem:[%s1573_s1 + $0x28] sm:$0xff] }
   0x2   :  { %v204_v3 = vld [vmem:[%s1573_s1] sm:$0xff]  ;;  %722 = vset.pattern.permute.xlu0 %v757_v0  ;;  %290 = vperm.xlu2 %724, %v208_v1   ;;  %v207_v5 = vld [vmem:[%s1573_s1 + $0x18] sm:$0xff]  ;;  %v205_v6 = vld [vmem:[%s1573_s1 + $0x8] sm:$0xff] }
   0x3   :  { %280 = vperm.xlu1 %723, %v206_v2   ;;  %270 = vperm.xlu0 %722, %v204_v3   ;;  %v212_v7 = vld [vmem:[%s1573_s1 + $0x40] sm:$0xff]  ;;  %v211_v8 = vld [vmem:[%s1573_s1 + $0x38] sm:$0xff]  ;;  %v210_v9 = vld [vmem:[%s1573_s1 + $0x30] sm:$0xff] }
   0x4   :  { %v215_v10 = vld [vmem:[%s1573_s1 + $0x58] sm:$0xff]  ;;  %v214_v11 = vld [vmem:[%s1573_s1 + $0x50] sm:$0xff]  ;;  %v213_v12 = vld [vmem:[%s1573_s1 + $0x48] sm:$0xff] }
   0x5   :  { %v218_v13 = vld [vmem:[%s1573_s1 + $0x70] sm:$0xff]  ;;  %v217_v14 = vld [vmem:[%s1573_s1 + $0x68] sm:$0xff]  ;;  %v216_v15 = vld [vmem:[%s1573_s1 + $0x60] sm:$0xff] }
   0x6   :  { %v221_v16 = vld [vmem:[%s1573_s1 + $0x88] sm:$0xff]  ;;  %v220_v17 = vld [vmem:[%s1573_s1 + $0x80] sm:$0xff]  ;;  %v219_v18 = vld [vmem:[%s1573_s1 + $0x78] sm:$0xff] }
   0x7   :  { %v224_v19 = vld [vmem:[%s1573_s1 + $0xa0] sm:$0xff]  ;;  %v223_v20 = vld [vmem:[%s1573_s1 + $0x98] sm:$0xff]  ;;  %v222_v21 = vld [vmem:[%s1573_s1 + $0x90] sm:$0xff] }
   0x8   :  { %v227_v22 = vld [vmem:[%s1573_s1 + $0xb8] sm:$0xff]  ;;  %v226_v23 = vld [vmem:[%s1573_s1 + $0xb0] sm:$0xff]  ;;  %v225_v24 = vld [vmem:[%s1573_s1 + $0xa8] sm:$0xff] }
   0x9   :  { %v230_v25 = vld [vmem:[%s1573_s1 + $0xd0] sm:$0xff]  ;;  %v229_v26 = vld [vmem:[%s1573_s1 + $0xc8] sm:$0xff]  ;;  %v228_v27 = vld [vmem:[%s1573_s1 + $0xc0] sm:$0xff] }
   0xa   :  { %295 = vperm.xlu2 %724, %v209_v4   ;;  %v233_v28 = vld [vmem:[%s1573_s1 + $0xe8] sm:$0xff]  ;;  %v232_v29 = vld [vmem:[%s1573_s1 + $0xe0] sm:$0xff]  ;;  %v231_v30 = vld [vmem:[%s1573_s1 + $0xd8] sm:$0xff] }
   0xb   :  { %285 = vperm.xlu1 %723, %v207_v5   ;;  %275 = vperm.xlu0 %722, %v205_v6   ;;  %v236_v31 = vld [vmem:[%s1573_s1 + $0x100] sm:$0xff]  ;;  %v235_v32 = vld [vmem:[%s1573_s1 + $0xf8] sm:$0xff]  ;;  %v234_v33 = vld [vmem:[%s1573_s1 + $0xf0] sm:$0xff] }
   0xc   :  { %v239_v34 = vld [vmem:[%s1573_s1 + $0x118] sm:$0xff]  ;;  %v238_v35 = vld [vmem:[%s1573_s1 + $0x110] sm:$0xff]  ;;  %v237_v36 = vld [vmem:[%s1573_s1 + $0x108] sm:$0xff] }
   0xd   :  { %v242_v38 = vld [vmem:[%s1573_s1 + $0x130] sm:$0xff]  ;;  %v241_v39 = vld [vmem:[%s1573_s1 + $0x128] sm:$0xff]  ;;  %v240_v40 = vld [vmem:[%s1573_s1 + $0x120] sm:$0xff] }
   0xe   :  { %v245_v42 = vld [vmem:[%s1573_s1 + $0x148] sm:$0xff]  ;;  %v244_v43 = vld [vmem:[%s1573_s1 + $0x140] sm:$0xff]  ;;  %v243_v44 = vld [vmem:[%s1573_s1 + $0x138] sm:$0xff] }
   0xf   :  { %v248_v46 = vld [vmem:[%s1573_s1 + $0x160] sm:$0xff]  ;;  %v247_v47 = vld [vmem:[%s1573_s1 + $0x158] sm:$0xff]  ;;  %v246_v48 = vld [vmem:[%s1573_s1 + $0x150] sm:$0xff] }
  0x10   :  { %v251_v52 = vld [vmem:[%s1573_s1 + $0x178] sm:$0xff]  ;;  %v250_v53 = vld [vmem:[%s1573_s1 + $0x170] sm:$0xff]  ;;  %v249_v54 = vld [vmem:[%s1573_s1 + $0x168] sm:$0xff] }
  0x11   :  { %v254_v58 = vld [vmem:[%s1573_s1 + $0x190] sm:$0xff]  ;;  %v253_v59 = vld [vmem:[%s1573_s1 + $0x188] sm:$0xff]  ;;  %v252_v60 = vld [vmem:[%s1573_s1 + $0x180] sm:$0xff] }
  0x12   :  { %310 = vperm.xlu2 %724, %v212_v7   ;;  %v257_v0 = vld [vmem:[%s1573_s1 + $0x1a8] sm:$0xff]  ;;  %v256_v1 = vld [vmem:[%s1573_s1 + $0x1a0] sm:$0xff]  ;;  %v255_v2 = vld [vmem:[%s1573_s1 + $0x198] sm:$0xff] }
  0x13   :  { %305 = vperm.xlu1 %723, %v211_v8   ;;  %300 = vperm.xlu0 %722, %v210_v9   ;;  %v260_v6 = vld [vmem:[%s1573_s1 + $0x1c0] sm:$0xff]  ;;  %v259_v7 = vld [vmem:[%s1573_s1 + $0x1b8] sm:$0xff]  ;;  %v258_v8 = vld [vmem:[%s1573_s1 + $0x1b0] sm:$0xff] }
  0x1a   :  { %325 = vperm.xlu2 %724, %v215_v10  }
  0x1b   :  { %320 = vperm.xlu1 %723, %v214_v11   ;;  %315 = vperm.xlu0 %722, %v213_v12   ;;  %v263_v12 = vld [vmem:[%s1573_s1 + $0x1d8] sm:$0xff] }
  0x22   :  { %340 = vperm.xlu2 %724, %v218_v13   ;;  %v262_v13 = vld [vmem:[%s1573_s1 + $0x1d0] sm:$0xff] }
  0x23   :  { %335 = vperm.xlu1 %723, %v217_v14   ;;  %330 = vperm.xlu0 %722, %v216_v15   ;;  %v261_v14 = vld [vmem:[%s1573_s1 + $0x1c8] sm:$0xff] }
  0x2a   :  { %355 = vperm.xlu2 %724, %v221_v16  }
  0x2b   :  { %350 = vperm.xlu1 %723, %v220_v17   ;;  %345 = vperm.xlu0 %722, %v219_v18   ;;  %v266_v18 = vld [vmem:[%s1573_s1 + $0x1f0] sm:$0xff] }
  0x32   :  { %370 = vperm.xlu2 %724, %v224_v19   ;;  %v265_v19 = vld [vmem:[%s1573_s1 + $0x1e8] sm:$0xff] }
  0x33   :  { %365 = vperm.xlu1 %723, %v223_v20   ;;  %360 = vperm.xlu0 %722, %v222_v21   ;;  %v264_v20 = vld [vmem:[%s1573_s1 + $0x1e0] sm:$0xff] }
  0x3a   :  { %385 = vperm.xlu2 %724, %v227_v22  }
  0x3b   :  { %380 = vperm.xlu1 %723, %v226_v23   ;;  %375 = vperm.xlu0 %722, %v225_v24   ;;  %v267_v24 = vld [vmem:[%s1573_s1 + $0x1f8] sm:$0xff] }
  0x42   :  { %400 = vperm.xlu2 %724, %v230_v25  }
  0x43   :  { %395 = vperm.xlu1 %723, %v229_v26   ;;  %390 = vperm.xlu0 %722, %v228_v27  }
  0x4a   :  { %415 = vperm.xlu2 %724, %v233_v28  }
  0x4b   :  { %410 = vperm.xlu1 %723, %v232_v29   ;;  %405 = vperm.xlu0 %722, %v231_v30  }
  0x52   :  { %430 = vperm.xlu2 %724, %v236_v31  }
  0x53   :  { %425 = vperm.xlu1 %723, %v235_v32   ;;  %420 = vperm.xlu0 %722, %v234_v33  }
  0x5a   :  { %445 = vperm.xlu2 %724, %v239_v34  }
  0x5b   :  { %440 = vperm.xlu1 %723, %v238_v35   ;;  %435 = vperm.xlu0 %722, %v237_v36  }
  0x5c   :  { %v291_v37 = vpop.permute.xlu2 %290 }
  0x5d   :  { %661 = vst.msk [vmem:[%s1574_s2 + $0x220] sm:$0xff] %vm139_vm0, %v291_v37 }
  0x62   :  { %460 = vperm.xlu2 %724, %v242_v38  }
  0x63   :  { %455 = vperm.xlu1 %723, %v241_v39   ;;  %450 = vperm.xlu0 %722, %v240_v40  }
  0x64   :  { %v296_v41 = vpop.permute.xlu2 %295 }
  0x65   :  { %662 = vst.msk [vmem:[%s1574_s2 + $0x228] sm:$0xff] %vm139_vm0, %v296_v41 }
  0x6a   :  { %475 = vperm.xlu2 %724, %v245_v42  }
  0x6b   :  { %470 = vperm.xlu1 %723, %v244_v43   ;;  %465 = vperm.xlu0 %722, %v243_v44  }
  0x6c   :  { %v311_v45 = vpop.permute.xlu2 %310 }
  0x6d   :  { %665 = vst.msk [vmem:[%s1574_s2 + $0x240] sm:$0xff] %vm139_vm0, %v311_v45 }
  0x72   :  { %490 = vperm.xlu2 %724, %v248_v46  }
  0x73   :  { %485 = vperm.xlu1 %723, %v247_v47   ;;  %480 = vperm.xlu0 %722, %v246_v48  }
  0x74   :  { %v326_v49 = vpop.permute.xlu2 %325 }
  0x75   :  { %668 = vst.msk [vmem:[%s1574_s2 + $0x258] sm:$0xff] %vm139_vm0, %v326_v49  ;;  %v281_v50 = vpop.permute.xlu1 %280  ;;  %v271_v51 = vpop.permute.xlu0 %270 }
  0x76   :  { %659 = vst.msk [vmem:[%s1574_s2 + $0x210] sm:$0xff] %vm139_vm0, %v281_v50 }
  0x77   :  { %657 = vst.msk [vmem:[%s1574_s2 + $0x200] sm:$0xff] %vm139_vm0, %v271_v51 }
  0x7a   :  { %505 = vperm.xlu2 %724, %v251_v52  }
  0x7b   :  { %500 = vperm.xlu1 %723, %v250_v53   ;;  %495 = vperm.xlu0 %722, %v249_v54  }
  0x7c   :  { %v341_v55 = vpop.permute.xlu2 %340 }
  0x7d   :  { %671 = vst.msk [vmem:[%s1574_s2 + $0x270] sm:$0xff] %vm139_vm0, %v341_v55  ;;  %v286_v56 = vpop.permute.xlu1 %285  ;;  %v276_v57 = vpop.permute.xlu0 %275 }
  0x7e   :  { %660 = vst.msk [vmem:[%s1574_s2 + $0x218] sm:$0xff] %vm139_vm0, %v286_v56 }
  0x7f   :  { %658 = vst.msk [vmem:[%s1574_s2 + $0x208] sm:$0xff] %vm139_vm0, %v276_v57 }
  0x82   :  { %520 = vperm.xlu2 %724, %v254_v58  }
  0x83   :  { %515 = vperm.xlu1 %723, %v253_v59   ;;  %510 = vperm.xlu0 %722, %v252_v60   ;;  %v725_v60 = vld [vmem:[%s1575_s0] ss:$0 sm:$0xff] }
  0x84   :  { %v356_v61 = vpop.permute.xlu2 %355  ;;  %140 = vst.msk [vmem:[%s1574_s2] sm:$0xff] %vm139_vm0, %v725_v60 }
  0x85   :  { %674 = vst.msk [vmem:[%s1574_s2 + $0x288] sm:$0xff] %vm139_vm0, %v356_v61  ;;  %v306_v62 = vpop.permute.xlu1 %305  ;;  %v301_v63 = vpop.permute.xlu0 %300  ;;  %v726_v61 = vld [vmem:[%s1575_s0 + $0x1] ss:$0 sm:$0xff] }
  0x86   :  { %664 = vst.msk [vmem:[%s1574_s2 + $0x238] sm:$0xff] %vm139_vm0, %v306_v62  ;;  %v727_v62 = vld [vmem:[%s1575_s0 + $0x2] ss:$0 sm:$0xff] }
  0x87   :  { %663 = vst.msk [vmem:[%s1574_s2 + $0x230] sm:$0xff] %vm139_vm0, %v301_v63 }
  0x88   :  { %141 = vst.msk [vmem:[%s1574_s2 + $0x8] sm:$0xff] %vm139_vm0, %v725_v60 }
  0x89   :  { %142 = vst.msk [vmem:[%s1574_s2 + $0x10] sm:$0xff] %vm139_vm0, %v726_v61 }
  0x8a   :  { %535 = vperm.xlu2 %724, %v257_v0   ;;  %143 = vst.msk [vmem:[%s1574_s2 + $0x18] sm:$0xff] %vm139_vm0, %v726_v61 }
  0x8b   :  { %530 = vperm.xlu1 %723, %v256_v1   ;;  %525 = vperm.xlu0 %722, %v255_v2   ;;  %v728_v1 = vld [vmem:[%s1575_s0 + $0x3] ss:$0 sm:$0xff]  ;;  %144 = vst.msk [vmem:[%s1574_s2 + $0x20] sm:$0xff] %vm139_vm0, %v727_v62  ;;  %v729_v2 = vld [vmem:[%s1575_s0 + $0x4] ss:$0 sm:$0xff] }
  0x8c   :  { %v371_v3 = vpop.permute.xlu2 %370  ;;  %145 = vst.msk [vmem:[%s1574_s2 + $0x28] sm:$0xff] %vm139_vm0, %v727_v62 }
  0x8d   :  { %677 = vst.msk [vmem:[%s1574_s2 + $0x2a0] sm:$0xff] %vm139_vm0, %v371_v3  ;;  %v321_v4 = vpop.permute.xlu1 %320  ;;  %v316_v5 = vpop.permute.xlu0 %315  ;;  %v730_v3 = vld [vmem:[%s1575_s0 + $0x5] ss:$0 sm:$0xff] }
  0x8e   :  { %667 = vst.msk [vmem:[%s1574_s2 + $0x250] sm:$0xff] %vm139_vm0, %v321_v4 }
  0x8f   :  { %666 = vst.msk [vmem:[%s1574_s2 + $0x248] sm:$0xff] %vm139_vm0, %v316_v5 }
  0x90   :  { %146 = vst.msk [vmem:[%s1574_s2 + $0x30] sm:$0xff] %vm139_vm0, %v728_v1 }
  0x91   :  { %147 = vst.msk [vmem:[%s1574_s2 + $0x38] sm:$0xff] %vm139_vm0, %v728_v1 }
  0x92   :  { %550 = vperm.xlu2 %724, %v260_v6   ;;  %148 = vst.msk [vmem:[%s1574_s2 + $0x40] sm:$0xff] %vm139_vm0, %v729_v2  ;;  %v731_v6 = vld [vmem:[%s1575_s0 + $0x6] ss:$0 sm:$0xff] }
  0x93   :  { %545 = vperm.xlu1 %723, %v259_v7   ;;  %540 = vperm.xlu0 %722, %v258_v8   ;;  %149 = vst.msk [vmem:[%s1574_s2 + $0x48] sm:$0xff] %vm139_vm0, %v729_v2  ;;  %v732_v7 = vld [vmem:[%s1575_s0 + $0x7] ss:$0 sm:$0xff]  ;;  %v733_v8 = vld [vmem:[%s1575_s0 + $0x8] ss:$0 sm:$0xff] }
  0x94   :  { %v386_v9 = vpop.permute.xlu2 %385  ;;  %150 = vst.msk [vmem:[%s1574_s2 + $0x50] sm:$0xff] %vm139_vm0, %v730_v3 }
  0x95   :  { %680 = vst.msk [vmem:[%s1574_s2 + $0x2b8] sm:$0xff] %vm139_vm0, %v386_v9  ;;  %v336_v10 = vpop.permute.xlu1 %335  ;;  %v331_v11 = vpop.permute.xlu0 %330  ;;  %v734_v9 = vld [vmem:[%s1575_s0 + $0x9] ss:$0 sm:$0xff] }
  0x96   :  { %670 = vst.msk [vmem:[%s1574_s2 + $0x268] sm:$0xff] %vm139_vm0, %v336_v10 }
  0x97   :  { %669 = vst.msk [vmem:[%s1574_s2 + $0x260] sm:$0xff] %vm139_vm0, %v331_v11  ;;  %v735_v11 = vld [vmem:[%s1575_s0 + $0xa] ss:$0 sm:$0xff] }
  0x98   :  { %151 = vst.msk [vmem:[%s1574_s2 + $0x58] sm:$0xff] %vm139_vm0, %v730_v3 }
  0x99   :  { %152 = vst.msk [vmem:[%s1574_s2 + $0x60] sm:$0xff] %vm139_vm0, %v731_v6 }
  0x9a   :  { %565 = vperm.xlu2 %724, %v263_v12   ;;  %153 = vst.msk [vmem:[%s1574_s2 + $0x68] sm:$0xff] %vm139_vm0, %v731_v6  ;;  %v736_v12 = vld [vmem:[%s1575_s0 + $0xb] ss:$0 sm:$0xff] }
  0x9b   :  { %560 = vperm.xlu1 %723, %v262_v13   ;;  %555 = vperm.xlu0 %722, %v261_v14   ;;  %154 = vst.msk [vmem:[%s1574_s2 + $0x70] sm:$0xff] %vm139_vm0, %v732_v7  ;;  %v737_v13 = vld [vmem:[%s1575_s0 + $0xc] ss:$0 sm:$0xff]  ;;  %v738_v14 = vld [vmem:[%s1575_s0 + $0xd] ss:$0 sm:$0xff] }
  0x9c   :  { %v401_v15 = vpop.permute.xlu2 %400  ;;  %155 = vst.msk [vmem:[%s1574_s2 + $0x78] sm:$0xff] %vm139_vm0, %v732_v7 }
  0x9d   :  { %683 = vst.msk [vmem:[%s1574_s2 + $0x2d0] sm:$0xff] %vm139_vm0, %v401_v15  ;;  %v351_v16 = vpop.permute.xlu1 %350  ;;  %v346_v17 = vpop.permute.xlu0 %345  ;;  %v739_v15 = vld [vmem:[%s1575_s0 + $0xe] ss:$0 sm:$0xff] }
  0x9e   :  { %673 = vst.msk [vmem:[%s1574_s2 + $0x280] sm:$0xff] %vm139_vm0, %v351_v16  ;;  %v740_v16 = vld [vmem:[%s1575_s0 + $0xf] ss:$0 sm:$0xff] }
  0x9f   :  { %672 = vst.msk [vmem:[%s1574_s2 + $0x278] sm:$0xff] %vm139_vm0, %v346_v17  ;;  %v741_v17 = vld [vmem:[%s1575_s0 + $0x10] ss:$0 sm:$0xff] }
  0xa0   :  { %156 = vst.msk [vmem:[%s1574_s2 + $0x80] sm:$0xff] %vm139_vm0, %v733_v8 }
  0xa1   :  { %157 = vst.msk [vmem:[%s1574_s2 + $0x88] sm:$0xff] %vm139_vm0, %v733_v8 }
  0xa2   :  { %580 = vperm.xlu2 %724, %v266_v18   ;;  %158 = vst.msk [vmem:[%s1574_s2 + $0x90] sm:$0xff] %vm139_vm0, %v734_v9  ;;  %v742_v18 = vld [vmem:[%s1575_s0 + $0x11] ss:$0 sm:$0xff] }
  0xa3   :  { %575 = vperm.xlu1 %723, %v265_v19   ;;  %570 = vperm.xlu0 %722, %v264_v20   ;;  %159 = vst.msk [vmem:[%s1574_s2 + $0x98] sm:$0xff] %vm139_vm0, %v734_v9  ;;  %v743_v19 = vld [vmem:[%s1575_s0 + $0x12] ss:$0 sm:$0xff]  ;;  %v744_v20 = vld [vmem:[%s1575_s0 + $0x13] ss:$0 sm:$0xff] }
  0xa4   :  { %v416_v21 = vpop.permute.xlu2 %415  ;;  %160 = vst.msk [vmem:[%s1574_s2 + $0xa0] sm:$0xff] %vm139_vm0, %v735_v11 }
  0xa5   :  { %686 = vst.msk [vmem:[%s1574_s2 + $0x2e8] sm:$0xff] %vm139_vm0, %v416_v21  ;;  %v366_v22 = vpop.permute.xlu1 %365  ;;  %v361_v23 = vpop.permute.xlu0 %360  ;;  %v745_v21 = vld [vmem:[%s1575_s0 + $0x14] ss:$0 sm:$0xff] }
  0xa6   :  { %676 = vst.msk [vmem:[%s1574_s2 + $0x298] sm:$0xff] %vm139_vm0, %v366_v22  ;;  %v746_v22 = vld [vmem:[%s1575_s0 + $0x15] ss:$0 sm:$0xff] }
  0xa7   :  { %675 = vst.msk [vmem:[%s1574_s2 + $0x290] sm:$0xff] %vm139_vm0, %v361_v23  ;;  %v747_v23 = vld [vmem:[%s1575_s0 + $0x16] ss:$0 sm:$0xff] }
  0xa8   :  { %161 = vst.msk [vmem:[%s1574_s2 + $0xa8] sm:$0xff] %vm139_vm0, %v735_v11 }
  0xa9   :  { %162 = vst.msk [vmem:[%s1574_s2 + $0xb0] sm:$0xff] %vm139_vm0, %v736_v12 }
  0xaa   :  { %163 = vst.msk [vmem:[%s1574_s2 + $0xb8] sm:$0xff] %vm139_vm0, %v736_v12 }
  0xab   :  { %585 = vperm.xlu0 %722, %v267_v24   ;;  %164 = vst.msk [vmem:[%s1574_s2 + $0xc0] sm:$0xff] %vm139_vm0, %v737_v13  ;;  %v748_v24 = vld [vmem:[%s1575_s0 + $0x17] ss:$0 sm:$0xff] }
  0xac   :  { %v431_v25 = vpop.permute.xlu2 %430  ;;  %165 = vst.msk [vmem:[%s1574_s2 + $0xc8] sm:$0xff] %vm139_vm0, %v737_v13 }
  0xad   :  { %689 = vst.msk [vmem:[%s1574_s2 + $0x300] sm:$0xff] %vm139_vm0, %v431_v25  ;;  %v381_v26 = vpop.permute.xlu1 %380  ;;  %v376_v27 = vpop.permute.xlu0 %375  ;;  %v749_v25 = vld [vmem:[%s1575_s0 + $0x18] ss:$0 sm:$0xff] }
  0xae   :  { %679 = vst.msk [vmem:[%s1574_s2 + $0x2b0] sm:$0xff] %vm139_vm0, %v381_v26  ;;  %v750_v26 = vld [vmem:[%s1575_s0 + $0x19] ss:$0 sm:$0xff] }
  0xaf   :  { %678 = vst.msk [vmem:[%s1574_s2 + $0x2a8] sm:$0xff] %vm139_vm0, %v376_v27  ;;  %v751_v27 = vld [vmem:[%s1575_s0 + $0x1a] ss:$0 sm:$0xff] }
  0xb0   :  { %166 = vst.msk [vmem:[%s1574_s2 + $0xd0] sm:$0xff] %vm139_vm0, %v738_v14 }
  0xb1   :  { %167 = vst.msk [vmem:[%s1574_s2 + $0xd8] sm:$0xff] %vm139_vm0, %v738_v14 }
  0xb2   :  { %168 = vst.msk [vmem:[%s1574_s2 + $0xe0] sm:$0xff] %vm139_vm0, %v739_v15 }
  0xb3   :  { %169 = vst.msk [vmem:[%s1574_s2 + $0xe8] sm:$0xff] %vm139_vm0, %v739_v15 }
  0xb4   :  { %v446_v28 = vpop.permute.xlu2 %445  ;;  %170 = vst.msk [vmem:[%s1574_s2 + $0xf0] sm:$0xff] %vm139_vm0, %v740_v16 }
  0xb5   :  { %692 = vst.msk [vmem:[%s1574_s2 + $0x318] sm:$0xff] %vm139_vm0, %v446_v28  ;;  %v396_v29 = vpop.permute.xlu1 %395  ;;  %v391_v30 = vpop.permute.xlu0 %390  ;;  %v752_v28 = vld [vmem:[%s1575_s0 + $0x1b] ss:$0 sm:$0xff] }
  0xb6   :  { %682 = vst.msk [vmem:[%s1574_s2 + $0x2c8] sm:$0xff] %vm139_vm0, %v396_v29  ;;  %v753_v29 = vld [vmem:[%s1575_s0 + $0x1c] ss:$0 sm:$0xff] }
  0xb7   :  { %681 = vst.msk [vmem:[%s1574_s2 + $0x2c0] sm:$0xff] %vm139_vm0, %v391_v30  ;;  %v754_v30 = vld [vmem:[%s1575_s0 + $0x1d] ss:$0 sm:$0xff] }
  0xb8   :  { %171 = vst.msk [vmem:[%s1574_s2 + $0xf8] sm:$0xff] %vm139_vm0, %v740_v16 }
  0xb9   :  { %172 = vst.msk [vmem:[%s1574_s2 + $0x100] sm:$0xff] %vm139_vm0, %v741_v17 }
  0xba   :  { %173 = vst.msk [vmem:[%s1574_s2 + $0x108] sm:$0xff] %vm139_vm0, %v741_v17 }
  0xbb   :  { %174 = vst.msk [vmem:[%s1574_s2 + $0x110] sm:$0xff] %vm139_vm0, %v742_v18 }
  0xbc   :  { %v461_v31 = vpop.permute.xlu2 %460  ;;  %175 = vst.msk [vmem:[%s1574_s2 + $0x118] sm:$0xff] %vm139_vm0, %v742_v18 }
  0xbd   :  { %695 = vst.msk [vmem:[%s1574_s2 + $0x330] sm:$0xff] %vm139_vm0, %v461_v31  ;;  %v411_v32 = vpop.permute.xlu1 %410  ;;  %v406_v33 = vpop.permute.xlu0 %405  ;;  %v755_v31 = vld [vmem:[%s1575_s0 + $0x1e] ss:$0 sm:$0xff] }
  0xbe   :  { %685 = vst.msk [vmem:[%s1574_s2 + $0x2e0] sm:$0xff] %vm139_vm0, %v411_v32  ;;  %v756_v32 = vld [vmem:[%s1575_s0 + $0x1f] ss:$0 sm:$0xff] }
  0xbf   :  { %684 = vst.msk [vmem:[%s1574_s2 + $0x2d8] sm:$0xff] %vm139_vm0, %v406_v33 }
  0xc0   :  { %176 = vst.msk [vmem:[%s1574_s2 + $0x120] sm:$0xff] %vm139_vm0, %v743_v19 }
  0xc1   :  { %177 = vst.msk [vmem:[%s1574_s2 + $0x128] sm:$0xff] %vm139_vm0, %v743_v19 }
  0xc2   :  { %178 = vst.msk [vmem:[%s1574_s2 + $0x130] sm:$0xff] %vm139_vm0, %v744_v20 }
  0xc3   :  { %179 = vst.msk [vmem:[%s1574_s2 + $0x138] sm:$0xff] %vm139_vm0, %v744_v20 }
  0xc4   :  { %v476_v34 = vpop.permute.xlu2 %475  ;;  %180 = vst.msk [vmem:[%s1574_s2 + $0x140] sm:$0xff] %vm139_vm0, %v745_v21 }
  0xc5   :  { %698 = vst.msk [vmem:[%s1574_s2 + $0x348] sm:$0xff] %vm139_vm0, %v476_v34  ;;  %v426_v35 = vpop.permute.xlu1 %425  ;;  %v421_v36 = vpop.permute.xlu0 %420 }
  0xc6   :  { %688 = vst.msk [vmem:[%s1574_s2 + $0x2f8] sm:$0xff] %vm139_vm0, %v426_v35 }
  0xc7   :  { %687 = vst.msk [vmem:[%s1574_s2 + $0x2f0] sm:$0xff] %vm139_vm0, %v421_v36 }
  0xc8   :  { %181 = vst.msk [vmem:[%s1574_s2 + $0x148] sm:$0xff] %vm139_vm0, %v745_v21 }
  0xc9   :  { %182 = vst.msk [vmem:[%s1574_s2 + $0x150] sm:$0xff] %vm139_vm0, %v746_v22 }
  0xca   :  { %183 = vst.msk [vmem:[%s1574_s2 + $0x158] sm:$0xff] %vm139_vm0, %v746_v22 }
  0xcb   :  { %184 = vst.msk [vmem:[%s1574_s2 + $0x160] sm:$0xff] %vm139_vm0, %v747_v23 }
  0xcc   :  { %v491_v37 = vpop.permute.xlu2 %490  ;;  %185 = vst.msk [vmem:[%s1574_s2 + $0x168] sm:$0xff] %vm139_vm0, %v747_v23 }
  0xcd   :  { %701 = vst.msk [vmem:[%s1574_s2 + $0x360] sm:$0xff] %vm139_vm0, %v491_v37  ;;  %v441_v38 = vpop.permute.xlu1 %440  ;;  %v436_v39 = vpop.permute.xlu0 %435 }
  0xce   :  { %691 = vst.msk [vmem:[%s1574_s2 + $0x310] sm:$0xff] %vm139_vm0, %v441_v38 }
  0xcf   :  { %690 = vst.msk [vmem:[%s1574_s2 + $0x308] sm:$0xff] %vm139_vm0, %v436_v39 }
  0xd0   :  { %186 = vst.msk [vmem:[%s1574_s2 + $0x170] sm:$0xff] %vm139_vm0, %v748_v24 }
  0xd1   :  { %187 = vst.msk [vmem:[%s1574_s2 + $0x178] sm:$0xff] %vm139_vm0, %v748_v24 }
  0xd2   :  { %188 = vst.msk [vmem:[%s1574_s2 + $0x180] sm:$0xff] %vm139_vm0, %v749_v25 }
  0xd3   :  { %189 = vst.msk [vmem:[%s1574_s2 + $0x188] sm:$0xff] %vm139_vm0, %v749_v25 }
  0xd4   :  { %v506_v40 = vpop.permute.xlu2 %505  ;;  %190 = vst.msk [vmem:[%s1574_s2 + $0x190] sm:$0xff] %vm139_vm0, %v750_v26 }
  0xd5   :  { %704 = vst.msk [vmem:[%s1574_s2 + $0x378] sm:$0xff] %vm139_vm0, %v506_v40  ;;  %v456_v41 = vpop.permute.xlu1 %455  ;;  %v451_v42 = vpop.permute.xlu0 %450 }
  0xd6   :  { %694 = vst.msk [vmem:[%s1574_s2 + $0x328] sm:$0xff] %vm139_vm0, %v456_v41 }
  0xd7   :  { %693 = vst.msk [vmem:[%s1574_s2 + $0x320] sm:$0xff] %vm139_vm0, %v451_v42 }
  0xd8   :  { %191 = vst.msk [vmem:[%s1574_s2 + $0x198] sm:$0xff] %vm139_vm0, %v750_v26 }
  0xd9   :  { %192 = vst.msk [vmem:[%s1574_s2 + $0x1a0] sm:$0xff] %vm139_vm0, %v751_v27 }
  0xda   :  { %193 = vst.msk [vmem:[%s1574_s2 + $0x1a8] sm:$0xff] %vm139_vm0, %v751_v27 }
  0xdb   :  { %194 = vst.msk [vmem:[%s1574_s2 + $0x1b0] sm:$0xff] %vm139_vm0, %v752_v28 }
  0xdc   :  { %v521_v43 = vpop.permute.xlu2 %520  ;;  %195 = vst.msk [vmem:[%s1574_s2 + $0x1b8] sm:$0xff] %vm139_vm0, %v752_v28 }
  0xdd   :  { %707 = vst.msk [vmem:[%s1574_s2 + $0x390] sm:$0xff] %vm139_vm0, %v521_v43  ;;  %v471_v44 = vpop.permute.xlu1 %470  ;;  %v466_v45 = vpop.permute.xlu0 %465 }
  0xde   :  { %697 = vst.msk [vmem:[%s1574_s2 + $0x340] sm:$0xff] %vm139_vm0, %v471_v44 }
  0xdf   :  { %696 = vst.msk [vmem:[%s1574_s2 + $0x338] sm:$0xff] %vm139_vm0, %v466_v45 }
  0xe0   :  { %196 = vst.msk [vmem:[%s1574_s2 + $0x1c0] sm:$0xff] %vm139_vm0, %v753_v29 }
  0xe1   :  { %197 = vst.msk [vmem:[%s1574_s2 + $0x1c8] sm:$0xff] %vm139_vm0, %v753_v29 }
  0xe2   :  { %198 = vst.msk [vmem:[%s1574_s2 + $0x1d0] sm:$0xff] %vm139_vm0, %v754_v30 }
  0xe3   :  { %199 = vst.msk [vmem:[%s1574_s2 + $0x1d8] sm:$0xff] %vm139_vm0, %v754_v30 }
  0xe4   :  { %v536_v46 = vpop.permute.xlu2 %535  ;;  %200 = vst.msk [vmem:[%s1574_s2 + $0x1e0] sm:$0xff] %vm139_vm0, %v755_v31 }
  0xe5   :  { %710 = vst.msk [vmem:[%s1574_s2 + $0x3a8] sm:$0xff] %vm139_vm0, %v536_v46  ;;  %v486_v47 = vpop.permute.xlu1 %485  ;;  %v481_v48 = vpop.permute.xlu0 %480 }
  0xe6   :  { %700 = vst.msk [vmem:[%s1574_s2 + $0x358] sm:$0xff] %vm139_vm0, %v486_v47 }
  0xe7   :  { %699 = vst.msk [vmem:[%s1574_s2 + $0x350] sm:$0xff] %vm139_vm0, %v481_v48 }
  0xe8   :  { %201 = vst.msk [vmem:[%s1574_s2 + $0x1e8] sm:$0xff] %vm139_vm0, %v755_v31 }
  0xe9   :  { %202 = vst.msk [vmem:[%s1574_s2 + $0x1f0] sm:$0xff] %vm139_vm0, %v756_v32 }
  0xea   :  { %203 = vst.msk [vmem:[%s1574_s2 + $0x1f8] sm:$0xff] %vm139_vm0, %v756_v32 }
  0xec   :  { %v551_v49 = vpop.permute.xlu2 %550 }
  0xed   :  { %713 = vst.msk [vmem:[%s1574_s2 + $0x3c0] sm:$0xff] %vm139_vm0, %v551_v49  ;;  %v501_v50 = vpop.permute.xlu1 %500  ;;  %v496_v51 = vpop.permute.xlu0 %495 }
  0xee   :  { %703 = vst.msk [vmem:[%s1574_s2 + $0x370] sm:$0xff] %vm139_vm0, %v501_v50 }
  0xef   :  { %702 = vst.msk [vmem:[%s1574_s2 + $0x368] sm:$0xff] %vm139_vm0, %v496_v51 }
  0xf4   :  { %v566_v52 = vpop.permute.xlu2 %565 }
  0xf5   :  { %716 = vst.msk [vmem:[%s1574_s2 + $0x3d8] sm:$0xff] %vm139_vm0, %v566_v52  ;;  %v516_v53 = vpop.permute.xlu1 %515  ;;  %v511_v54 = vpop.permute.xlu0 %510 }
  0xf6   :  { %706 = vst.msk [vmem:[%s1574_s2 + $0x388] sm:$0xff] %vm139_vm0, %v516_v53 }
  0xf7   :  { %705 = vst.msk [vmem:[%s1574_s2 + $0x380] sm:$0xff] %vm139_vm0, %v511_v54 }
  0xfc   :  { %v581_v55 = vpop.permute.xlu2 %580 }
  0xfd   :  { %719 = vst.msk [vmem:[%s1574_s2 + $0x3f0] sm:$0xff] %vm139_vm0, %v581_v55  ;;  %v531_v56 = vpop.permute.xlu1 %530  ;;  %v526_v57 = vpop.permute.xlu0 %525 }
  0xfe   :  { %709 = vst.msk [vmem:[%s1574_s2 + $0x3a0] sm:$0xff] %vm139_vm0, %v531_v56 }
  0xff   :  { %708 = vst.msk [vmem:[%s1574_s2 + $0x398] sm:$0xff] %vm139_vm0, %v526_v57 }
 0x105   :  { %v546_v58 = vpop.permute.xlu1 %545  ;;  %v541_v59 = vpop.permute.xlu0 %540 }
 0x106   :  { %712 = vst.msk [vmem:[%s1574_s2 + $0x3b8] sm:$0xff] %vm139_vm0, %v546_v58 }
 0x107   :  { %711 = vst.msk [vmem:[%s1574_s2 + $0x3b0] sm:$0xff] %vm139_vm0, %v541_v59 }
 0x10d   :  { %v561_v63 = vpop.permute.xlu1 %560  ;;  %v556_v0 = vpop.permute.xlu0 %555 }
 0x10e   :  { %715 = vst.msk [vmem:[%s1574_s2 + $0x3d0] sm:$0xff] %vm139_vm0, %v561_v63 }
 0x10f   :  { %714 = vst.msk [vmem:[%s1574_s2 + $0x3c8] sm:$0xff] %vm139_vm0, %v556_v0 }
 0x115   :  { %v576_v4 = vpop.permute.xlu1 %575  ;;  %v571_v5 = vpop.permute.xlu0 %570 }
 0x116   :  { %718 = vst.msk [vmem:[%s1574_s2 + $0x3e8] sm:$0xff] %vm139_vm0, %v576_v4 }
 0x117   :  { %717 = vst.msk [vmem:[%s1574_s2 + $0x3e0] sm:$0xff] %vm139_vm0, %v571_v5 }
 0x11d   :  { %v586_v10 = vpop.permute.xlu0 %585 }
 0x11e   :  { %720 = vst.msk [vmem:[%s1574_s2 + $0x3f8] sm:$0xff] %vm139_vm0, %v586_v10 }

</bundles_post_ra>
